<compile_context>
chip_gen: v6e
topology: v6e:2x2x1
jax: 0.10.0
libtpu: 0.0.40
codegen_flags: <defaults>
</compile_context>

<pallas_src>
import jax
import jax.numpy as jnp
from jax.experimental import pallas as pl
from jax.experimental.pallas import tpu as pltpu


def _round_up(x, m):
    return ((x + m - 1) // m) * m


def _pick_tile(padded, target, align):
    """Largest multiple of `align` that divides `padded` and is <= target."""
    best = align
    cand = align
    limit = min(target, padded)
    while cand <= limit:
        if padded % cand == 0:
            best = cand
        cand += align
    return best


def _vmem_cap_bytes():
    """~75% of physical VMEM (headroom for compiler scratch)."""
    try:
        phys = pltpu.get_tpu_info().vmem_capacity_bytes
    except Exception:
        phys = 64 * 2 ** 20  # assume the smallest generation (v7x) if unknown
    return int(phys) * 3 // 4


# ----------------------------- kernels --------------------------------------


def _forecast_tiled_kernel(x_ref, w_ref, b_ref, o_ref):
    # Grid = (B tiles, H tiles, K tiles); K is the reduction axis (last).
    # o_ref is f32 and its BlockSpec ignores k, so it stays resident across
    # the reduction — accumulate directly into it (no scratch, no final copy).
    k = pl.program_id(2)

    @pl.when(k == 0)
    def _():
        o_ref[...] = jnp.zeros_like(o_ref)

    # bf16 x bf16 -> f32 accumulation on the MXU.
    o_ref[...] += jnp.dot(x_ref[...], w_ref[...],
                          preferred_element_type=jnp.float32)

    @pl.when(k == pl.num_programs(2) - 1)
    def _():
        # Bias added exactly once, at finalize (VPU broadcast-add).
        o_ref[...] += b_ref[...]


def _forecast_single_kernel(x_ref, w_ref, b_ref, o_ref):
    # Whole problem in one block: no reduction loop, no conditionals.
    o_ref[...] = (
        jnp.dot(x_ref[...], w_ref[...], preferred_element_type=jnp.float32)
        + b_ref[...]
    )


# ----------------------------- wrapper ---------------------------------------


def prepare_params(w, b, *, compute_dtype=jnp.bfloat16):
    """One-time parameter prep (cast to bf16 + pad to 128-alignment).

    Hoisted out of the per-call path: call this at model init / checkpoint
    load time and reuse the result for every forward call.
    """
    D, H = w.shape
    Dp = _round_up(D, 128)
    Hp = _round_up(H, 128)
    w_p = jnp.pad(w.astype(compute_dtype), ((0, Dp - D), (0, Hp - H)))
    b_p = jnp.pad(b.astype(jnp.float32), (0, Hp - H)).reshape(1, Hp)
    return {"w": w_p, "b": b_p, "D": D, "H": H, "dtype": compute_dtype}


def base_model_forward(x, params, *, tm=256, tn=1024, tk=2048):
    """Forward pass: (B, S, I) -> (B, forecast_horizon).

    Args:
        x:      (B, S, I) float32 input.
        params: output of prepare_params() (padded bf16 W, f32 bias).
    """
    B, S, I = x.shape
    D, H = params["D"], params["H"]
    assert S * I == D, "seq_len * input_size must match weight rows"
    w_p, b_p = params["w"], params["b"]
    Dp, Hp = w_p.shape
    cd = params["dtype"]
    cbytes = jnp.dtype(cd).itemsize

    x_flat = x.reshape(B, D).astype(cd)   # glue reshape + cast, plain JAX
    vmem_cap = _vmem_cap_bytes()

    # ---- small-problem fast path: single unpadded-batch block -----------
    single_bytes = (B * Dp + Dp * Hp) * cbytes + (B + 1) * Hp * 4
    if B <= tm and Hp <= tn and Dp <= tk and single_bytes <= vmem_cap // 2:
        x_p = x_flat if Dp == D else jnp.pad(x_flat, ((0, 0), (0, Dp - D)))
        cost = pl.CostEstimate(flops=2 * B * Dp * Hp, transcendentals=0,
                               bytes_accessed=int(single_bytes))
        out = pl.pallas_call(
            _forecast_single_kernel,
            out_shape=jax.ShapeDtypeStruct((B, Hp), jnp.float32),
            grid=(1,),
            in_specs=[
                pl.BlockSpec((B, Dp), lambda i: (0, 0)),     # x (full array)
                pl.BlockSpec((Dp, Hp), lambda i: (0, 0)),    # w (full array)
                pl.BlockSpec((1, Hp), lambda i: (0, 0)),     # bias
            ],
            out_specs=pl.BlockSpec((B, Hp), lambda i: (0, 0)),
            compiler_params=pltpu.CompilerParams(
                dimension_semantics=("arbitrary",),
                vmem_limit_bytes=int(
                    min(vmem_cap, max(32 * 2 ** 20, 2 * single_bytes))),
            ),
            cost_estimate=cost,
        )(x_p, w_p, b_p)
        return out[:, :H]

    # ---- general tiled path ----------------------------------------------
    Bp = _round_up(B, 8)
    tm_eff = _pick_tile(Bp, tm, 8)
    tn_eff = _pick_tile(Hp, tn, 128)
    tk_eff = _pick_tile(Dp, tk, 128)

    # Keep at least 2 tiles on a "parallel" axis so both v7x TensorCores
    # get work when B collapses to a single M tile.
    if Bp // tm_eff == 1 and Hp // tn_eff == 1 and Hp > 128:
        tn_eff = _pick_tile(Hp, Hp // 2, 128)

    if Bp != B or Dp != D:
        x_p = jnp.pad(x_flat, ((0, Bp - B), (0, Dp - D)))
    else:
        x_p = x_flat

    grid = (Bp // tm_eff, Hp // tn_eff, Dp // tk_eff)

    # Double-buffered bf16 x/w tiles + f32 output tile (resident across K,
    # double-buffered across (i, j)) + bias tile.
    vmem_need = (2 * (tm_eff * tk_eff + tk_eff * tn_eff) * cbytes
                 + 2 * tm_eff * tn_eff * 4
                 + 2 * tn_eff * 4)
    vmem_limit = int(min(vmem_cap, max(32 * 2 ** 20, 2 * vmem_need)))

    cost = pl.CostEstimate(
        flops=2 * Bp * Dp * Hp,
        transcendentals=0,
        bytes_accessed=int(Bp * Dp * cbytes      # x read
                           + Dp * Hp * cbytes    # w read (dominant)
                           + Hp * 4              # bias read
                           + Bp * Hp * 4),       # out write
    )

    out = pl.pallas_call(
        _forecast_tiled_kernel,
        out_shape=jax.ShapeDtypeStruct((Bp, Hp), jnp.float32),
        grid=grid,
        in_specs=[
            pl.BlockSpec((tm_eff, tk_eff), lambda i, j, k: (i, k)),   # x
            pl.BlockSpec((tk_eff, tn_eff), lambda i, j, k: (k, j)),   # w
            pl.BlockSpec((1, tn_eff),      lambda i, j, k: (0, j)),   # bias
        ],
        out_specs=pl.BlockSpec((tm_eff, tn_eff), lambda i, j, k: (i, j)),
        compiler_params=pltpu.CompilerParams(
            dimension_semantics=("parallel", "parallel", "arbitrary"),
            vmem_limit_bytes=vmem_limit,
        ),
        cost_estimate=cost,
    )(x_p, w_p, b_p)

    return out[:B, :H]


if __name__ == "__main__":
    key = jax.random.PRNGKey(0)

    def reference(x, w, b):
        # Same bf16-rounded operands the kernel consumes, f32 accumulation.
        Bq = x.shape[0]
        Dq = w.shape[0]
        x_q = x.reshape(Bq, Dq).astype(jnp.bfloat16).astype(jnp.float32)
        w_q = w.astype(jnp.bfloat16).astype(jnp.float32)
        return jnp.dot(x_q, w_q, precision=jax.lax.Precision.HIGHEST) + b

    # Case 1: small shapes from the forward() contract -> fast path.
    B, S, I, H = 2, 8, 32, 4            # (batch, seq_len, input_size), horizon
    D = S * I
    k1, k2, k3, key = jax.random.split(key, 4)
    x = jax.random.normal(k1, (B, S, I), jnp.float32)
    w = jax.random.normal(k2, (D, H), jnp.float32) / jnp.sqrt(D)
    b = jax.random.normal(k3, (H,), jnp.float32) * 0.01
    params = prepare_params(w, b)        # one-time prep, hoisted out of forward
    y = jax.block_until_ready(base_model_forward(x, params))
    assert y.shape == (B, H)
    assert jnp.allclose(y, reference(x, w, b), atol=2e-3, rtol=2e-3)

    # Case 2: non-tile-multiple shapes with small forced tiles -> exercises
    # the tiled reduction path (grid (2, 3, 5)) with init/accumulate/finalize.
    B2, S2, I2, H2 = 16, 16, 40, 300
    D2 = S2 * I2
    k1, k2, k3, key = jax.random.split(key, 4)
    x2 = jax.random.normal(k1, (B2, S2, I2), jnp.float32)
    w2 = jax.random.normal(k2, (D2, H2), jnp.float32) / jnp.sqrt(D2)
    b2 = jax.random.normal(k3, (H2,), jnp.float32) * 0.01
    params2 = prepare_params(w2, b2)
    y2 = jax.block_until_ready(
        base_model_forward(x2, params2, tm=8, tn=128, tk=128))
    assert y2.shape == (B2, H2)
    assert jnp.allclose(y2, reference(x2, w2, b2), atol=5e-3, rtol=5e-3)

    # TODO(synk): BaseModel.forward is abstract in PyTorch; this kernel realizes
    # the minimal concrete linear forecaster satisfying its (B,S,I)->(B,H)
    # contract. save()/load()/get_parameter_count() are host-side checkpoint
    # plumbing with no device compute and are not translated.
    print("KERNEL_OK")
</pallas_src>

<mosaic_0001>
module attributes {stable_mosaic.version = 11 : i64} {
  func.func @_forecast_single_kernel(%arg0: i32, %arg1: memref<2x256xbf16, #tpu.memory_space<vmem>>, %arg2: memref<256x128xbf16, #tpu.memory_space<vmem>>, %arg3: memref<1x128xf32, #tpu.memory_space<vmem>>, %arg4: memref<2x128xf32, #tpu.memory_space<vmem>>) attributes {dimension_semantics = [#tpu.dimension_semantics<arbitrary>], iteration_bounds = array<i64: 1>, scalar_prefetch = 0 : i64, scratch_operands = 0 : i64, tpu.core_type = #tpu.core_type<tc>, window_params = [{pipeline_mode = #tpu.pipeline_mode<synchronous>, transform_indices = @transform_0, window_bounds = array<i64: 2, 256>}, {pipeline_mode = #tpu.pipeline_mode<synchronous>, transform_indices = @transform_1, window_bounds = array<i64: 256, 128>}, {pipeline_mode = #tpu.pipeline_mode<synchronous>, transform_indices = @transform_2, window_bounds = array<i64: 1, 128>}, {pipeline_mode = #tpu.pipeline_mode<synchronous>, transform_indices = @transform_3, window_bounds = array<i64: 2, 128>}]} {
    %c0 = arith.constant 0 : index
    %c0_0 = arith.constant 0 : index
    %0 = vector.load %arg1[%c0, %c0_0] : memref<2x256xbf16, #tpu.memory_space<vmem>>, vector<2x256xbf16>
    %c0_1 = arith.constant 0 : index
    %c0_2 = arith.constant 0 : index
    %1 = vector.load %arg2[%c0_1, %c0_2] : memref<256x128xbf16, #tpu.memory_space<vmem>>, vector<256x128xbf16>
    %cst = arith.constant dense<0.000000e+00> : vector<2x128xf32>
    %2 = tpu.matmul %0, %1, %cst {dimension_numbers = #tpu.dot_dimension_numbers<[1], [0], [0], [1], [0, 0, 1, 1], [], []>} : vector<2x256xbf16>, vector<256x128xbf16>, vector<2x128xf32> -> vector<2x128xf32>
    %c0_3 = arith.constant 0 : index
    %c0_4 = arith.constant 0 : index
    %3 = vector.load %arg3[%c0_3, %c0_4] : memref<1x128xf32, #tpu.memory_space<vmem>>, vector<1x128xf32>
    %4 = vector.broadcast %3 : vector<1x128xf32> to vector<2x128xf32>
    %5 = arith.addf %2, %4 : vector<2x128xf32>
    %c0_5 = arith.constant 0 : index
    %c0_6 = arith.constant 0 : index
    %6 = vector.load %arg4[%c0_5, %c0_6] : memref<2x128xf32, #tpu.memory_space<vmem>>, vector<2x128xf32>
    tpu.vector_store %arg4[%c0_5, %c0_6], %5 {strides = array<i32>} : memref<2x128xf32, #tpu.memory_space<vmem>>, vector<2x128xf32>,
    return
  }
  func.func @transform_0(%arg0: i32) -> (i32, i32) {
    %c0_i32 = arith.constant 0 : i32
    %c0_i32_0 = arith.constant 0 : i32
    %c0_i32_1 = arith.constant 0 : i32
    return %c0_i32, %c0_i32_0 : i32, i32
  }
  func.func @transform_1(%arg0: i32) -> (i32, i32) {
    %c0_i32 = arith.constant 0 : i32
    %c0_i32_0 = arith.constant 0 : i32
    %c0_i32_1 = arith.constant 0 : i32
    return %c0_i32, %c0_i32_0 : i32, i32
  }
  func.func @transform_2(%arg0: i32) -> (i32, i32) {
    %c0_i32 = arith.constant 0 : i32
    %c0_i32_0 = arith.constant 0 : i32
    %c0_i32_1 = arith.constant 0 : i32
    return %c0_i32, %c0_i32_0 : i32, i32
  }
  func.func @transform_3(%arg0: i32) -> (i32, i32) {
    %c0_i32 = arith.constant 0 : i32
    %c0_i32_0 = arith.constant 0 : i32
    %c0_i32_1 = arith.constant 0 : i32
    return %c0_i32, %c0_i32_0 : i32, i32
  }
}

</mosaic_0001>

<bundles_post_ra>
// kernel: tpu_custom_call.1
= control target key start
LH: loop header
LB: loop body
LE: loop exit
PB: predicated region body
PF: predicated region fallthrough
CT: control target
= control target key end

     0   :  { %8 = vsyncpa [#allocation3], 0  ;;  %s426_s0 = inlined_call_operand.hbm [shape: bf16[2,256], index: 0, kind: input, shape index: {}]   ;;  %s427_s1 = inlined_call_operand.hbm [shape: bf16[256,128], index: 1, kind: input, shape index: {}]   ;;  %s428_s2 = inlined_call_operand.vmem [shape: f32[1,128], index: 2, kind: input, shape index: {}]   ;;  %s429_s3 = inlined_call_operand.hbm [shape: f32[2,128], index: 3, kind: output, shape index: {}]  }
   0x1   :  { %9 = vsyncpa [#allocation6], 0 }
   0x2   :  { %10 = vsyncpa [#allocation4], 0  ;;  %s388_s12 = smov [#allocation2]   ;;  %s389_s14 = smov [#allocation5]  }
   0x3   :  { %s17_s13 = sshll.u32 %s388_s12, 4  ;;  %s26_s15 = sshll.u32 %s389_s14, 4  ;;  %s18_s13 = int_to_ptr.vmem [resolvable:$true] %s17_s13  ;;  %s27_s15 = int_to_ptr.vmem [resolvable:$true] %s26_s15 }
   0x4   :  { %s330_s16 = scalar_lea.vmem %s18_s13, 32  ;;  %p335_p1 = scmp.lt.s32.totalorder %s18_s13, %s18_s13 }
   0x5   :  { %p331_p0 = scmp.ne.s32.totalorder %s18_s13, %s330_s16  ;;  %p336_p2 = scmp.lt.s32.totalorder %s330_s16, %s330_s16 }
   0x7   :  { %p337_p3 = por %p336_p2, %p335_p1 }
   0x9   :  { %p338_p4 = pnand %p337_p3, %p331_p0 }
   0xb   :  { %341 = shalt.err (!%p338_p4)
}
   0xc   :  { %20 = dma.hbm_to_vmem [thread:$0]  %s426_s0, 32, %s18_s13, [#allocation3]  }
   0xd   :  { %s350_s19 = scalar_lea.vmem %s27_s15, 2048  ;;  %p355_p6 = scmp.lt.s32.totalorder %s27_s15, %s27_s15 }
   0xe   :  { %p351_p5 = scmp.ne.s32.totalorder %s27_s15, %s350_s19  ;;  %p356_p7 = scmp.lt.s32.totalorder %s350_s19, %s350_s19 }
  0x10   :  { %p357_p8 = por %p356_p7, %p355_p6 }
  0x12   :  { %p358_p9 = pnand %p357_p8, %p351_p5 }
  0x14   :  { %361 = shalt.err (!%p358_p9)
}
  0x15   :  { %s390_s20 = smov 64   ;;  %s391_s21 = smov 4  }
  0x16   :  { %32 = dma.hbm_to_vmem [thread:$0]  %s427_s1, 2048, %s27_s15, [#allocation6], %s390_s20, %s390_s20, %s391_s21  }
  0x17   :  { %382 = dma.done.wait [#allocation3], 32  }
  0x18   :  { %383 = vsyncadd [#allocation3], 4294967264 }
  0x19   :  { %384 = dma.done.wait [#allocation6], 2048  }
  0x1a   :  { %385 = vsyncadd [#allocation6], 4294965248  ;;  %v306_v0 = vld [vmem:[#allocation5 + $0x78] sm:$0xff]   ;;  %v308_v2 = vld [vmem:[#allocation5 + $0x70] sm:$0xff]   ;;  %v392_v6 = vmov 1966171168   ;;  %v94_v8 = vlaneseq }
  0x1b   :  { %v307_v1 = vld [vmem:[#allocation5 + $0x38] sm:$0xff]   ;;  %278 = vmatprep.subr.bf16.mxu0 %v306_v0  ;;  %v309_v3 = vld [vmem:[#allocation5 + $0x30] sm:$0xff]   ;;  %v310_v4 = vld [vmem:[#allocation5 + $0x68] sm:$0xff]   ;;  %v92_v7 = vunpack.c.l.s4 %v392_v6  ;;  %s393_s24 = smov [#allocation7]  }
  0x1c   :  { %279 = vmatpush3.bf16.msra.mxu0 %v307_v1  ;;  %v311_v5 = vld [vmem:[#allocation5 + $0x28] sm:$0xff]   ;;  %v312_v9 = vld [vmem:[#allocation5 + $0x60] sm:$0xff]   ;;  %v95_v12 = vshrl.u32 %v94_v8, 7  ;;  %v314_v13 = vld [vmem:[#allocation5 + $0x58] sm:$0xff]   ;;  %s250_s25 = sshll.u32 %s393_s24, 4  ;;  %s251_s25 = int_to_ptr.vmem [resolvable:$true] %s250_s25 }
  0x1d   :  { %280 = vmatprep.subr.bf16.mxu0 %v308_v2  ;;  %v313_v10 = vld [vmem:[#allocation5 + $0x20] sm:$0xff]   ;;  %v93_v11 = vunpack.c.0.s8 %v92_v7  ;;  %v315_v14 = vld [vmem:[#allocation5 + $0x18] sm:$0xff]   ;;  %v316_v16 = vld [vmem:[#allocation5 + $0x50] sm:$0xff]   ;;  %s362_s26 = scalar_lea.vmem %s251_s25, 32  ;;  %p367_p11 = scmp.lt.s32.totalorder %s251_s25, %s251_s25 }
  0x1e   :  { %v261_v17 = vld.sshfl [vmem:[#allocation2] sm:$0x11 pattern:$0x75316420]  ;;  %v317_v19 = vld [vmem:[#allocation5 + $0x10] sm:$0xff]   ;;  %v318_v21 = vld [vmem:[#allocation5 + $0x48] sm:$0xff]   ;;  %p363_p10 = scmp.ne.s32.totalorder %s251_s25, %s362_s26  ;;  %p368_p12 = scmp.lt.s32.totalorder %s362_s26, %s362_s26 }
  0x1f   :  { %v96_v15 = vsub.s32 %v93_v11, %v95_v12  ;;  %v90_v18 = vcombine.high %v261_v17, %v261_v17  ;;  %v319_v22 = vld [vmem:[#allocation5 + $0x8] sm:$0xff]   ;;  %v320_v23 = vld [vmem:[#allocation5 + $0x40] sm:$0xff]   ;;  %v260_v27 = vld [vmem:[%s428_s2] ss:$0 sm:$0xff] }
  0x20   :  { %281 = vmatpush3.bf16.msra.mxu0 %v309_v3  ;;  %v321_v24 = vld [vmem:[#allocation5] sm:$0xff]   ;;  %p369_p13 = por %p368_p12, %p367_p11 }
  0x21   :  { %282 = vmatprep.subr.bf16.mxu0 %v310_v4  ;;  %v104_v20 = vrot.slane %v90_v18, %v96_v15  ;;  %v97_v25 = vrot.slane %v261_v17, %v96_v15 }
  0x22   :  { %p370_p0 = pnand %p369_p13, %p363_p10 }
  0x23   :  { %235 = vmatprep.mubr.bf16.mxu0 %v104_v20 }
  0x24   :  { %283 = vmatpush3.bf16.msra.mxu0 %v311_v5 }
  0x25   :  { %284 = vmatprep.subr.bf16.mxu0 %v312_v9 }
  0x28   :  { %285 = vmatpush3.bf16.msra.mxu0 %v313_v10 }
  0x29   :  { %286 = vmatprep.subr.bf16.mxu0 %v314_v13 }
  0x2c   :  { %287 = vmatpush3.bf16.msra.mxu0 %v315_v14 }
  0x2d   :  { %288 = vmatprep.subr.bf16.mxu0 %v316_v16 }
  0x30   :  { %289 = vmatpush3.bf16.msra.mxu0 %v317_v19 }
  0x31   :  { %290 = vmatprep.subr.bf16.mxu0 %v318_v21 }
  0x34   :  { %291 = vmatpush3.bf16.msra.mxu0 %v319_v22 }
  0x35   :  { %292 = vmatprep.subr.bf16.mxu0 %v320_v23 }
  0x38   :  { %293 = vmatpush3.bf16.msra.mxu0 %v321_v24 }
  0x3b   :  { %236 = vmatmul.mubr.bf16.vlgmr.msra.gmra.mxu0 %v97_v25 }
  0xfb   :  { %v294_v26 = vpop.f32.mrf.mxu0 }
  0xfd   :  { %v295_v28 = vpop.f32.mrf.mxu0 }
  0xfe   :  { %v296_v29 = vadd.f32 %v295_v28, %v294_v26 }
  0xff   :  { %v297_v30 = vpop.f32.mrf.mxu0 }
 0x100   :  { %v238_v31 = vadd.f32 %v296_v29, %v260_v27 }
 0x101   :  { %v298_v32 = vpop.f32.mrf.mxu0 }
 0x102   :  { %243 = vst [vmem:[#allocation7] sm:$0x3] %v238_v31 }
 0x103   :  { %373 = shalt.err (!%p370_p0)
}
 0x104   :  { %253 = dma.vmem_to_hbm [thread:$0]  %s251_s25, 32, %s429_s3, [#allocation4]  }
 0x105   :  { %386 = dma.done.wait [#allocation4], 32  }
 0x106   :  { %387 = vsyncadd [#allocation4], 4294967264 }
 0x107   :  { %257 = vsyncpa [#allocation3], 1 }
 0x108   :  { %258 = vsyncpa [#allocation6], 1 }
 0x109   :  { %259 = vsyncpa [#allocation4], 1 }

</bundles_post_ra>
